<compile_context>
chip_gen: v5e
topology: v5e:2x2
jax: 0.10.0
libtpu: 0.0.40
codegen_flags: <defaults>
</compile_context>

<pallas_src>
import jax
import jax.numpy as jnp
from jax.experimental import pallas as pl
from jax.experimental.pallas import tpu as pltpu

LANE = 128
SUBLANE = 8


def _round_up(n, m):
    return ((n + m - 1) // m) * m


# ----------------------------- fused Pallas kernel -------------------------- #

def make_fused_kernel(layer_specs, eps=1e-6):
    """Builds a kernel for a static layer structure.

    layer_specs: tuple of ("lin",) or ("res", d_real) entries, in network order.
    Kernel args: x_ref, <params in order>, o_ref.
      "lin" consumes (w, b); "res" consumes (w1, b1, w2, b2).
    Weight pad rows/cols and bias pad lanes are zero, and each normalized
    output is re-masked, so the running activation's pad lanes stay exactly 0.
    """

    def kernel(x_ref, *refs):
        o_ref = refs[-1]
        params = refs[:-1]
        y = x_ref[...]            # (TB, d_in) bf16 -- real (unpadded) input width
        masks = {}                # hoisted pad-lane masks, one per real width d
        idx = 0
        for spec in layer_specs:
            if spec[0] == "lin":
                w = params[idx][...]
                b = params[idx + 1][...]
                idx += 2
                # outer ffw nonlinearity is identity -> plain affine layer
                y = jnp.dot(y.astype(jnp.bfloat16), w,
                            preferred_element_type=jnp.float32) + b
            else:
                d = spec[1]       # real (unpadded) feature width
                w1 = params[idx][...]
                b1 = params[idx + 1][...]
                w2 = params[idx + 2][...]
                b2 = params[idx + 3][...]
                idx += 4
                # bottleneck MLP with relu (dropout = identity in eval mode)
                h = jnp.dot(y.astype(jnp.bfloat16), w1,
                            preferred_element_type=jnp.float32) + b1
                h = jnp.maximum(h, 0.0)
                h = jnp.dot(h.astype(jnp.bfloat16), w2,
                            preferred_element_type=jnp.float32) + b2
                h = jnp.maximum(h, 0.0)
                # residual add: pad lanes of both y and h are exactly zero
                z = y + h
                if d not in masks:
                    lane = jax.lax.broadcasted_iota(jnp.int32, z.shape, 1)
                    masks[d] = (lane < d).astype(jnp.float32)
                mask = masks[d]
                # my_normalize_axes(z, -1): one-pass mean/var over the d real
                # lanes (pad lanes are zero so unmasked sums are exact).
                s1 = jnp.sum(z, axis=-1, keepdims=True)
                s2 = jnp.sum(z * z, axis=-1, keepdims=True)
                mean = s1 * (1.0 / d)
                var = jnp.maximum(s2 - s1 * mean, 0.0) * (1.0 / (d - 1))
                std = jnp.sqrt(var)            # torch.std: unbiased; eps on std
                rinv = 1.0 / (std + eps)       # exact division; operand is (TB,1)
                y = (z - mean) * rinv * mask   # re-zero pad lanes
        o_ref[...] = y.astype(o_ref.dtype)

    return kernel


# ----------------------------- wrapper -------------------------------------- #

def my_dense_resnet_forward(x, flat_params, layer_specs, d_out_pad):
    """x: (B, d_in) bf16 (unpadded feature dim). Returns (B, d_out_pad) f32."""
    B, d_in = x.shape
    if B <= 512:
        TB = B                    # one tile; block dims == full dims is legal
        B_pad = B
    else:
        TB = 512                  # big tile amortizes per-step overhead and
        B_pad = _round_up(B, TB)  #   gives grid>=2 so v7x megacore can split
    if B_pad != B:
        x = jnp.zeros((B_pad, d_in), x.dtype).at[:B].set(x)

    grid = (B_pad // TB,)
    in_specs = [pl.BlockSpec((TB, d_in), lambda i: (i, 0))]
    for p in flat_params:
        # full-array, constant index_map -> weights stay VMEM-resident across
        # grid steps (no per-step re-fetch of the same block)
        in_specs.append(pl.BlockSpec(p.shape, lambda i: (0, 0)))
    out_specs = pl.BlockSpec((TB, d_out_pad), lambda i: (i, 0))

    kernel = make_fused_kernel(layer_specs)
    out = pl.pallas_call(
        kernel,
        out_shape=jax.ShapeDtypeStruct((B_pad, d_out_pad), jnp.float32),
        grid=grid,
        in_specs=in_specs,
        out_specs=out_specs,
        compiler_params=pltpu.CompilerParams(
            dimension_semantics=("parallel",),
            vmem_limit_bytes=32 * 1024 * 1024),
    )(x, *flat_params)
    return out[:B]


# ----------------------------- parameter setup ------------------------------ #

def _init_linear(key, fan_in, fan_out):
    """Deterministic init mimicking nn.Linear default: U(-1/sqrt(fan_in), +)."""
    kw, kb = jax.random.split(key)
    bound = 1.0 / jnp.sqrt(fan_in)
    w = jax.random.uniform(kw, (fan_in, fan_out), jnp.float32, -bound, bound)
    b = jax.random.uniform(kb, (1, fan_out), jnp.float32, -bound, bound)
    return w, b


def make_params(key, n_layers, block_size, bottlenecks):
    """[(lin_w, lin_b), [(w1,b1,w2,b2), ...]] per block, stored [D_in, D_out]."""
    params = []
    for i, (n, l, bn) in enumerate(zip(n_layers, block_size[1:], bottlenecks)):
        key, k_lin = jax.random.split(key)
        lin = _init_linear(k_lin, block_size[i], l)
        block = []
        for _ in range(n):
            key, k1, k2 = jax.random.split(key, 3)
            w1, b1 = _init_linear(k1, l, bn)
            w2, b2 = _init_linear(k2, bn, l)
            block.append((w1, b1, w2, b2))
        params.append((lin, block))
    return params


def _pad2(a, rows, cols, dtype):
    out = jnp.zeros((rows, cols), dtype)
    return out.at[: a.shape[0], : a.shape[1]].set(a.astype(dtype))


def prepare_kernel_params(params):
    """Flatten params, zero-pad to TPU-friendly shapes, cast weights to bf16.

    The first linear keeps its real input width (rounded to a sublane multiple)
    so the input activation is NOT inflated to 128 lanes in HBM; every later
    layer consumes the lane-128-padded in-kernel activation.
    Returns (flat_params, layer_specs, d_in_pad, d_out_pad).
    """
    flat, specs = [], []
    in_width = _round_up(params[0][0][0].shape[0], SUBLANE)
    d_in_pad = in_width
    for (lin_w, lin_b), block in params:
        dout_p = _round_up(lin_w.shape[1], LANE)
        flat.append(_pad2(lin_w, in_width, dout_p, jnp.bfloat16))
        flat.append(_pad2(lin_b, 1, dout_p, jnp.float32))
        specs.append(("lin",))
        for (w1, b1, w2, b2) in block:
            d, bn = w1.shape
            d_p = _round_up(d, LANE)
            bn_p = _round_up(bn, LANE)
            flat.append(_pad2(w1, d_p, bn_p, jnp.bfloat16))
            flat.append(_pad2(b1, 1, bn_p, jnp.float32))
            flat.append(_pad2(w2, bn_p, d_p, jnp.bfloat16))
            flat.append(_pad2(b2, 1, d_p, jnp.float32))
            specs.append(("res", d))
        in_width = dout_p          # next linear consumes padded activation
    return flat, tuple(specs), d_in_pad, in_width


# ----------------------------- pure-JAX reference --------------------------- #

def _ref_forward(x, params, eps=1e-6):
    """Mirrors the kernel math (bf16 MXU inputs, f32 accumulation + f32 norm)."""
    y = x
    for (lin_w, lin_b), block in params:
        y = jnp.dot(y.astype(jnp.bfloat16), lin_w.astype(jnp.bfloat16),
                    preferred_element_type=jnp.float32) + lin_b
        for (w1, b1, w2, b2) in block:
            h = jnp.dot(y.astype(jnp.bfloat16), w1.astype(jnp.bfloat16),
                        preferred_element_type=jnp.float32) + b1
            h = jax.nn.relu(h)
            h = jnp.dot(h.astype(jnp.bfloat16), w2.astype(jnp.bfloat16),
                        preferred_element_type=jnp.float32) + b2
            h = jax.nn.relu(h)
            z = y + h
            mean = jnp.mean(z, axis=-1, keepdims=True)
            std = jnp.std(z, axis=-1, keepdims=True, ddof=1)  # torch.std: unbiased
            y = (z - mean) / (std + eps)
    return y


# ----------------------------- main ------------------------------------------ #

if __name__ == "__main__":
    # my_dense_ResNet(n_layers=(2, 1), block_size=(32, 64, 64), bottlenecks=(16, 32))
    n_layers = (2, 1)
    block_size = (32, 64, 64)
    bottlenecks = (16, 32)
    batch = 8

    key = jax.random.PRNGKey(0)
    key, kx = jax.random.split(key)
    x = jax.random.normal(kx, (batch, block_size[0]), jnp.float32)

    params = make_params(key, n_layers, block_size, bottlenecks)
    flat_params, layer_specs, d_in_pad, d_out_pad = prepare_kernel_params(params)

    # kernel input: real feature width (rounded to sublane multiple), bf16
    x_in = jnp.zeros((batch, d_in_pad), jnp.bfloat16)
    x_in = x_in.at[:, : block_size[0]].set(x.astype(jnp.bfloat16))

    out_pad = jax.block_until_ready(
        my_dense_resnet_forward(x_in, flat_params, layer_specs, d_out_pad))
    d_out = block_size[-1]
    out = out_pad[:, :d_out]  # drop pad lanes outside the kernel

    ref = jax.block_until_ready(_ref_forward(x, params))

    assert out.shape == (batch, d_out)
    max_err = float(jnp.max(jnp.abs(out - ref)))
    assert jnp.allclose(out, ref, atol=2e-3, rtol=2e-3), (
        f"mismatch vs JAX reference (max abs err {max_err})")
    print("KERNEL_OK")
</pallas_src>

<mosaic_0001>
module attributes {stable_mosaic.version = 11 : i64} {
  func.func @kernel(%arg0: i32, %arg1: memref<8x32xbf16, #tpu.memory_space<vmem>>, %arg2: memref<32x128xbf16, #tpu.memory_space<vmem>>, %arg3: memref<1x128xf32, #tpu.memory_space<vmem>>, %arg4: memref<128x128xbf16, #tpu.memory_space<vmem>>, %arg5: memref<1x128xf32, #tpu.memory_space<vmem>>, %arg6: memref<128x128xbf16, #tpu.memory_space<vmem>>, %arg7: memref<1x128xf32, #tpu.memory_space<vmem>>, %arg8: memref<128x128xbf16, #tpu.memory_space<vmem>>, %arg9: memref<1x128xf32, #tpu.memory_space<vmem>>, %arg10: memref<128x128xbf16, #tpu.memory_space<vmem>>, %arg11: memref<1x128xf32, #tpu.memory_space<vmem>>, %arg12: memref<128x128xbf16, #tpu.memory_space<vmem>>, %arg13: memref<1x128xf32, #tpu.memory_space<vmem>>, %arg14: memref<128x128xbf16, #tpu.memory_space<vmem>>, %arg15: memref<1x128xf32, #tpu.memory_space<vmem>>, %arg16: memref<128x128xbf16, #tpu.memory_space<vmem>>, %arg17: memref<1x128xf32, #tpu.memory_space<vmem>>, %arg18: memref<8x128xf32, #tpu.memory_space<vmem>>) attributes {dimension_semantics = [#tpu.dimension_semantics<parallel>], iteration_bounds = array<i64: 1>, scalar_prefetch = 0 : i64, scratch_operands = 0 : i64, tpu.core_type = #tpu.core_type<tc>, window_params = [{transform_indices = @transform_0, window_bounds = array<i64: 8, 32>}, {pipeline_mode = #tpu.pipeline_mode<synchronous>, transform_indices = @transform_1, window_bounds = array<i64: 32, 128>}, {pipeline_mode = #tpu.pipeline_mode<synchronous>, transform_indices = @transform_2, window_bounds = array<i64: 1, 128>}, {pipeline_mode = #tpu.pipeline_mode<synchronous>, transform_indices = @transform_3, window_bounds = array<i64: 128, 128>}, {pipeline_mode = #tpu.pipeline_mode<synchronous>, transform_indices = @transform_4, window_bounds = array<i64: 1, 128>}, {pipeline_mode = #tpu.pipeline_mode<synchronous>, transform_indices = @transform_5, window_bounds = array<i64: 128, 128>}, {pipeline_mode = #tpu.pipeline_mode<synchronous>, transform_indices = @transform_6, window_bounds = array<i64: 1, 128>}, {pipeline_mode = #tpu.pipeline_mode<synchronous>, transform_indices = @transform_7, window_bounds = array<i64: 128, 128>}, {pipeline_mode = #tpu.pipeline_mode<synchronous>, transform_indices = @transform_8, window_bounds = array<i64: 1, 128>}, {pipeline_mode = #tpu.pipeline_mode<synchronous>, transform_indices = @transform_9, window_bounds = array<i64: 128, 128>}, {pipeline_mode = #tpu.pipeline_mode<synchronous>, transform_indices = @transform_10, window_bounds = array<i64: 1, 128>}, {pipeline_mode = #tpu.pipeline_mode<synchronous>, transform_indices = @transform_11, window_bounds = array<i64: 128, 128>}, {pipeline_mode = #tpu.pipeline_mode<synchronous>, transform_indices = @transform_12, window_bounds = array<i64: 1, 128>}, {pipeline_mode = #tpu.pipeline_mode<synchronous>, transform_indices = @transform_13, window_bounds = array<i64: 128, 128>}, {pipeline_mode = #tpu.pipeline_mode<synchronous>, transform_indices = @transform_14, window_bounds = array<i64: 1, 128>}, {pipeline_mode = #tpu.pipeline_mode<synchronous>, transform_indices = @transform_15, window_bounds = array<i64: 128, 128>}, {pipeline_mode = #tpu.pipeline_mode<synchronous>, transform_indices = @transform_16, window_bounds = array<i64: 1, 128>}, {transform_indices = @transform_17, window_bounds = array<i64: 8, 128>}]} {
    %c0 = arith.constant 0 : index
    %c0_0 = arith.constant 0 : index
    %0 = vector.load %arg1[%c0, %c0_0] : memref<8x32xbf16, #tpu.memory_space<vmem>>, vector<8x32xbf16>
    %c0_1 = arith.constant 0 : index
    %c0_2 = arith.constant 0 : index
    %1 = vector.load %arg2[%c0_1, %c0_2] : memref<32x128xbf16, #tpu.memory_space<vmem>>, vector<32x128xbf16>
    %c0_3 = arith.constant 0 : index
    %c0_4 = arith.constant 0 : index
    %2 = vector.load %arg3[%c0_3, %c0_4] : memref<1x128xf32, #tpu.memory_space<vmem>>, vector<1x128xf32>
    %cst = arith.constant dense<0.000000e+00> : vector<8x128xf32>
    %3 = tpu.matmul %0, %1, %cst {dimension_numbers = #tpu.dot_dimension_numbers<[1], [0], [0], [1], [0, 0, 1, 1], [], []>} : vector<8x32xbf16>, vector<32x128xbf16>, vector<8x128xf32> -> vector<8x128xf32>
    %4 = vector.broadcast %2 : vector<1x128xf32> to vector<8x128xf32>
    %5 = arith.addf %3, %4 : vector<8x128xf32>
    %c0_5 = arith.constant 0 : index
    %c0_6 = arith.constant 0 : index
    %6 = vector.load %arg4[%c0_5, %c0_6] : memref<128x128xbf16, #tpu.memory_space<vmem>>, vector<128x128xbf16>
    %c0_7 = arith.constant 0 : index
    %c0_8 = arith.constant 0 : index
    %7 = vector.load %arg5[%c0_7, %c0_8] : memref<1x128xf32, #tpu.memory_space<vmem>>, vector<1x128xf32>
    %c0_9 = arith.constant 0 : index
    %c0_10 = arith.constant 0 : index
    %8 = vector.load %arg6[%c0_9, %c0_10] : memref<128x128xbf16, #tpu.memory_space<vmem>>, vector<128x128xbf16>
    %c0_11 = arith.constant 0 : index
    %c0_12 = arith.constant 0 : index
    %9 = vector.load %arg7[%c0_11, %c0_12] : memref<1x128xf32, #tpu.memory_space<vmem>>, vector<1x128xf32>
    %10 = arith.truncf %5 : vector<8x128xf32> to vector<8x128xbf16>
    %cst_13 = arith.constant dense<0.000000e+00> : vector<8x128xf32>
    %11 = tpu.matmul %10, %6, %cst_13 {dimension_numbers = #tpu.dot_dimension_numbers<[1], [0], [0], [1], [0, 0, 1, 1], [], []>} : vector<8x128xbf16>, vector<128x128xbf16>, vector<8x128xf32> -> vector<8x128xf32>
    %12 = vector.broadcast %7 : vector<1x128xf32> to vector<8x128xf32>
    %13 = arith.addf %11, %12 : vector<8x128xf32>
    %cst_14 = arith.constant 0.000000e+00 : f32
    %14 = vector.broadcast %cst_14 : f32 to vector<8x128xf32>
    %15 = arith.maximumf %13, %14 : vector<8x128xf32>
    %16 = arith.truncf %15 : vector<8x128xf32> to vector<8x128xbf16>
    %cst_15 = arith.constant dense<0.000000e+00> : vector<8x128xf32>
    %17 = tpu.matmul %16, %8, %cst_15 {dimension_numbers = #tpu.dot_dimension_numbers<[1], [0], [0], [1], [0, 0, 1, 1], [], []>} : vector<8x128xbf16>, vector<128x128xbf16>, vector<8x128xf32> -> vector<8x128xf32>
    %18 = vector.broadcast %9 : vector<1x128xf32> to vector<8x128xf32>
    %19 = arith.addf %17, %18 : vector<8x128xf32>
    %cst_16 = arith.constant 0.000000e+00 : f32
    %20 = vector.broadcast %cst_16 : f32 to vector<8x128xf32>
    %21 = arith.maximumf %19, %20 : vector<8x128xf32>
    %22 = arith.addf %5, %21 : vector<8x128xf32>
    %23 = tpu.iota {dimensions = array<i32: 1>} : vector<8x128xi32>
    %c64_i32 = arith.constant 64 : i32
    %24 = vector.broadcast %c64_i32 : i32 to vector<8x128xi32>
    %25 = arith.cmpi slt, %23, %24 : vector<8x128xi32>
    %26 = arith.extui %25 : vector<8x128xi1> to vector<8x128xi32>
    %27 = arith.sitofp %26 : vector<8x128xi32> to vector<8x128xf32>
    %cst_17 = arith.constant dense<0.000000e+00> : vector<8xf32>
    %28 = vector.multi_reduction <add>, %22, %cst_17 [1] : vector<8x128xf32> to vector<8xf32>
    %29 = vector.shape_cast %28 : vector<8xf32> to vector<8x1xf32>
    %30 = arith.mulf %22, %22 : vector<8x128xf32>
    %cst_18 = arith.constant dense<0.000000e+00> : vector<8xf32>
    %31 = vector.multi_reduction <add>, %30, %cst_18 [1] : vector<8x128xf32> to vector<8xf32>
    %32 = vector.shape_cast %31 : vector<8xf32> to vector<8x1xf32>
    %cst_19 = arith.constant 1.562500e-02 : f32
    %33 = vector.broadcast %cst_19 : f32 to vector<8x1xf32>
    %34 = arith.mulf %29, %33 : vector<8x1xf32>
    %35 = arith.mulf %29, %34 : vector<8x1xf32>
    %36 = arith.subf %32, %35 : vector<8x1xf32>
    %cst_20 = arith.constant 0.000000e+00 : f32
    %37 = vector.broadcast %cst_20 : f32 to vector<8x1xf32>
    %38 = arith.maximumf %36, %37 : vector<8x1xf32>
    %cst_21 = arith.constant 0.0158730168 : f32
    %39 = vector.broadcast %cst_21 : f32 to vector<8x1xf32>
    %40 = arith.mulf %38, %39 : vector<8x1xf32>
    %41 = math.sqrt %40 : vector<8x1xf32>
    %cst_22 = arith.constant 9.99999997E-7 : f32
    %42 = vector.broadcast %cst_22 : f32 to vector<8x1xf32>
    %43 = arith.addf %41, %42 : vector<8x1xf32>
    %cst_23 = arith.constant 1.000000e+00 : f32
    %44 = vector.broadcast %cst_23 : f32 to vector<8x1xf32>
    %45 = arith.divf %44, %43 : vector<8x1xf32>
    %46 = vector.broadcast %34 : vector<8x1xf32> to vector<8x128xf32>
    %47 = arith.subf %22, %46 : vector<8x128xf32>
    %48 = vector.broadcast %45 : vector<8x1xf32> to vector<8x128xf32>
    %49 = arith.mulf %47, %48 : vector<8x128xf32>
    %50 = arith.mulf %49, %27 : vector<8x128xf32>
    %c0_24 = arith.constant 0 : index
    %c0_25 = arith.constant 0 : index
    %51 = vector.load %arg8[%c0_24, %c0_25] : memref<128x128xbf16, #tpu.memory_space<vmem>>, vector<128x128xbf16>
    %c0_26 = arith.constant 0 : index
    %c0_27 = arith.constant 0 : index
    %52 = vector.load %arg9[%c0_26, %c0_27] : memref<1x128xf32, #tpu.memory_space<vmem>>, vector<1x128xf32>
    %c0_28 = arith.constant 0 : index
    %c0_29 = arith.constant 0 : index
    %53 = vector.load %arg10[%c0_28, %c0_29] : memref<128x128xbf16, #tpu.memory_space<vmem>>, vector<128x128xbf16>
    %c0_30 = arith.constant 0 : index
    %c0_31 = arith.constant 0 : index
    %54 = vector.load %arg11[%c0_30, %c0_31] : memref<1x128xf32, #tpu.memory_space<vmem>>, vector<1x128xf32>
    %55 = arith.truncf %50 : vector<8x128xf32> to vector<8x128xbf16>
    %cst_32 = arith.constant dense<0.000000e+00> : vector<8x128xf32>
    %56 = tpu.matmul %55, %51, %cst_32 {dimension_numbers = #tpu.dot_dimension_numbers<[1], [0], [0], [1], [0, 0, 1, 1], [], []>} : vector<8x128xbf16>, vector<128x128xbf16>, vector<8x128xf32> -> vector<8x128xf32>
    %57 = vector.broadcast %52 : vector<1x128xf32> to vector<8x128xf32>
    %58 = arith.addf %56, %57 : vector<8x128xf32>
    %cst_33 = arith.constant 0.000000e+00 : f32
    %59 = vector.broadcast %cst_33 : f32 to vector<8x128xf32>
    %60 = arith.maximumf %58, %59 : vector<8x128xf32>
    %61 = arith.truncf %60 : vector<8x128xf32> to vector<8x128xbf16>
    %cst_34 = arith.constant dense<0.000000e+00> : vector<8x128xf32>
    %62 = tpu.matmul %61, %53, %cst_34 {dimension_numbers = #tpu.dot_dimension_numbers<[1], [0], [0], [1], [0, 0, 1, 1], [], []>} : vector<8x128xbf16>, vector<128x128xbf16>, vector<8x128xf32> -> vector<8x128xf32>
    %63 = vector.broadcast %54 : vector<1x128xf32> to vector<8x128xf32>
    %64 = arith.addf %62, %63 : vector<8x128xf32>
    %cst_35 = arith.constant 0.000000e+00 : f32
    %65 = vector.broadcast %cst_35 : f32 to vector<8x128xf32>
    %66 = arith.maximumf %64, %65 : vector<8x128xf32>
    %67 = arith.addf %50, %66 : vector<8x128xf32>
    %cst_36 = arith.constant dense<0.000000e+00> : vector<8xf32>
    %68 = vector.multi_reduction <add>, %67, %cst_36 [1] : vector<8x128xf32> to vector<8xf32>
    %69 = vector.shape_cast %68 : vector<8xf32> to vector<8x1xf32>
    %70 = arith.mulf %67, %67 : vector<8x128xf32>
    %cst_37 = arith.constant dense<0.000000e+00> : vector<8xf32>
    %71 = vector.multi_reduction <add>, %70, %cst_37 [1] : vector<8x128xf32> to vector<8xf32>
    %72 = vector.shape_cast %71 : vector<8xf32> to vector<8x1xf32>
    %cst_38 = arith.constant 1.562500e-02 : f32
    %73 = vector.broadcast %cst_38 : f32 to vector<8x1xf32>
    %74 = arith.mulf %69, %73 : vector<8x1xf32>
    %75 = arith.mulf %69, %74 : vector<8x1xf32>
    %76 = arith.subf %72, %75 : vector<8x1xf32>
    %cst_39 = arith.constant 0.000000e+00 : f32
    %77 = vector.broadcast %cst_39 : f32 to vector<8x1xf32>
    %78 = arith.maximumf %76, %77 : vector<8x1xf32>
    %cst_40 = arith.constant 0.0158730168 : f32
    %79 = vector.broadcast %cst_40 : f32 to vector<8x1xf32>
    %80 = arith.mulf %78, %79 : vector<8x1xf32>
    %81 = math.sqrt %80 : vector<8x1xf32>
    %cst_41 = arith.constant 9.99999997E-7 : f32
    %82 = vector.broadcast %cst_41 : f32 to vector<8x1xf32>
    %83 = arith.addf %81, %82 : vector<8x1xf32>
    %cst_42 = arith.constant 1.000000e+00 : f32
    %84 = vector.broadcast %cst_42 : f32 to vector<8x1xf32>
    %85 = arith.divf %84, %83 : vector<8x1xf32>
    %86 = vector.broadcast %74 : vector<8x1xf32> to vector<8x128xf32>
    %87 = arith.subf %67, %86 : vector<8x128xf32>
    %88 = vector.broadcast %85 : vector<8x1xf32> to vector<8x128xf32>
    %89 = arith.mulf %87, %88 : vector<8x128xf32>
    %90 = arith.mulf %89, %27 : vector<8x128xf32>
    %c0_43 = arith.constant 0 : index
    %c0_44 = arith.constant 0 : index
    %91 = vector.load %arg12[%c0_43, %c0_44] : memref<128x128xbf16, #tpu.memory_space<vmem>>, vector<128x128xbf16>
    %c0_45 = arith.constant 0 : index
    %c0_46 = arith.constant 0 : index
    %92 = vector.load %arg13[%c0_45, %c0_46] : memref<1x128xf32, #tpu.memory_space<vmem>>, vector<1x128xf32>
    %93 = arith.truncf %90 : vector<8x128xf32> to vector<8x128xbf16>
    %cst_47 = arith.constant dense<0.000000e+00> : vector<8x128xf32>
    %94 = tpu.matmul %93, %91, %cst_47 {dimension_numbers = #tpu.dot_dimension_numbers<[1], [0], [0], [1], [0, 0, 1, 1], [], []>} : vector<8x128xbf16>, vector<128x128xbf16>, vector<8x128xf32> -> vector<8x128xf32>
    %95 = vector.broadcast %92 : vector<1x128xf32> to vector<8x128xf32>
    %96 = arith.addf %94, %95 : vector<8x128xf32>
    %c0_48 = arith.constant 0 : index
    %c0_49 = arith.constant 0 : index
    %97 = vector.load %arg14[%c0_48, %c0_49] : memref<128x128xbf16, #tpu.memory_space<vmem>>, vector<128x128xbf16>
    %c0_50 = arith.constant 0 : index
    %c0_51 = arith.constant 0 : index
    %98 = vector.load %arg15[%c0_50, %c0_51] : memref<1x128xf32, #tpu.memory_space<vmem>>, vector<1x128xf32>
    %c0_52 = arith.constant 0 : index
    %c0_53 = arith.constant 0 : index
    %99 = vector.load %arg16[%c0_52, %c0_53] : memref<128x128xbf16, #tpu.memory_space<vmem>>, vector<128x128xbf16>
    %c0_54 = arith.constant 0 : index
    %c0_55 = arith.constant 0 : index
    %100 = vector.load %arg17[%c0_54, %c0_55] : memref<1x128xf32, #tpu.memory_space<vmem>>, vector<1x128xf32>
    %101 = arith.truncf %96 : vector<8x128xf32> to vector<8x128xbf16>
    %cst_56 = arith.constant dense<0.000000e+00> : vector<8x128xf32>
    %102 = tpu.matmul %101, %97, %cst_56 {dimension_numbers = #tpu.dot_dimension_numbers<[1], [0], [0], [1], [0, 0, 1, 1], [], []>} : vector<8x128xbf16>, vector<128x128xbf16>, vector<8x128xf32> -> vector<8x128xf32>
    %103 = vector.broadcast %98 : vector<1x128xf32> to vector<8x128xf32>
    %104 = arith.addf %102, %103 : vector<8x128xf32>
    %cst_57 = arith.constant 0.000000e+00 : f32
    %105 = vector.broadcast %cst_57 : f32 to vector<8x128xf32>
    %106 = arith.maximumf %104, %105 : vector<8x128xf32>
    %107 = arith.truncf %106 : vector<8x128xf32> to vector<8x128xbf16>
    %cst_58 = arith.constant dense<0.000000e+00> : vector<8x128xf32>
    %108 = tpu.matmul %107, %99, %cst_58 {dimension_numbers = #tpu.dot_dimension_numbers<[1], [0], [0], [1], [0, 0, 1, 1], [], []>} : vector<8x128xbf16>, vector<128x128xbf16>, vector<8x128xf32> -> vector<8x128xf32>
    %109 = vector.broadcast %100 : vector<1x128xf32> to vector<8x128xf32>
    %110 = arith.addf %108, %109 : vector<8x128xf32>
    %cst_59 = arith.constant 0.000000e+00 : f32
    %111 = vector.broadcast %cst_59 : f32 to vector<8x128xf32>
    %112 = arith.maximumf %110, %111 : vector<8x128xf32>
    %113 = arith.addf %96, %112 : vector<8x128xf32>
    %cst_60 = arith.constant dense<0.000000e+00> : vector<8xf32>
    %114 = vector.multi_reduction <add>, %113, %cst_60 [1] : vector<8x128xf32> to vector<8xf32>
    %115 = vector.shape_cast %114 : vector<8xf32> to vector<8x1xf32>
    %116 = arith.mulf %113, %113 : vector<8x128xf32>
    %cst_61 = arith.constant dense<0.000000e+00> : vector<8xf32>
    %117 = vector.multi_reduction <add>, %116, %cst_61 [1] : vector<8x128xf32> to vector<8xf32>
    %118 = vector.shape_cast %117 : vector<8xf32> to vector<8x1xf32>
    %cst_62 = arith.constant 1.562500e-02 : f32
    %119 = vector.broadcast %cst_62 : f32 to vector<8x1xf32>
    %120 = arith.mulf %115, %119 : vector<8x1xf32>
    %121 = arith.mulf %115, %120 : vector<8x1xf32>
    %122 = arith.subf %118, %121 : vector<8x1xf32>
    %cst_63 = arith.constant 0.000000e+00 : f32
    %123 = vector.broadcast %cst_63 : f32 to vector<8x1xf32>
    %124 = arith.maximumf %122, %123 : vector<8x1xf32>
    %cst_64 = arith.constant 0.0158730168 : f32
    %125 = vector.broadcast %cst_64 : f32 to vector<8x1xf32>
    %126 = arith.mulf %124, %125 : vector<8x1xf32>
    %127 = math.sqrt %126 : vector<8x1xf32>
    %cst_65 = arith.constant 9.99999997E-7 : f32
    %128 = vector.broadcast %cst_65 : f32 to vector<8x1xf32>
    %129 = arith.addf %127, %128 : vector<8x1xf32>
    %cst_66 = arith.constant 1.000000e+00 : f32
    %130 = vector.broadcast %cst_66 : f32 to vector<8x1xf32>
    %131 = arith.divf %130, %129 : vector<8x1xf32>
    %132 = vector.broadcast %120 : vector<8x1xf32> to vector<8x128xf32>
    %133 = arith.subf %113, %132 : vector<8x128xf32>
    %134 = vector.broadcast %131 : vector<8x1xf32> to vector<8x128xf32>
    %135 = arith.mulf %133, %134 : vector<8x128xf32>
    %136 = arith.mulf %135, %27 : vector<8x128xf32>
    %c0_67 = arith.constant 0 : index
    %c0_68 = arith.constant 0 : index
    %137 = vector.load %arg18[%c0_67, %c0_68] : memref<8x128xf32, #tpu.memory_space<vmem>>, vector<8x128xf32>
    tpu.vector_store %arg18[%c0_67, %c0_68], %136 {strides = array<i32>} : memref<8x128xf32, #tpu.memory_space<vmem>>, vector<8x128xf32>,
    return
  }
  func.func @transform_0(%arg0: i32) -> (i32, i32) {
    %c0_i32 = arith.constant 0 : i32
    %c0_i32_0 = arith.constant 0 : i32
    return %arg0, %c0_i32 : i32, i32
  }
  func.func @transform_1(%arg0: i32) -> (i32, i32) {
    %c0_i32 = arith.constant 0 : i32
    %c0_i32_0 = arith.constant 0 : i32
    %c0_i32_1 = arith.constant 0 : i32
    return %c0_i32, %c0_i32_0 : i32, i32
  }
  func.func @transform_2(%arg0: i32) -> (i32, i32) {
    %c0_i32 = arith.constant 0 : i32
    %c0_i32_0 = arith.constant 0 : i32
    %c0_i32_1 = arith.constant 0 : i32
    return %c0_i32, %c0_i32_0 : i32, i32
  }
  func.func @transform_3(%arg0: i32) -> (i32, i32) {
    %c0_i32 = arith.constant 0 : i32
    %c0_i32_0 = arith.constant 0 : i32
    %c0_i32_1 = arith.constant 0 : i32
    return %c0_i32, %c0_i32_0 : i32, i32
  }
  func.func @transform_4(%arg0: i32) -> (i32, i32) {
    %c0_i32 = arith.constant 0 : i32
    %c0_i32_0 = arith.constant 0 : i32
    %c0_i32_1 = arith.constant 0 : i32
    return %c0_i32, %c0_i32_0 : i32, i32
  }
  func.func @transform_5(%arg0: i32) -> (i32, i32) {
    %c0_i32 = arith.constant 0 : i32
    %c0_i32_0 = arith.constant 0 : i32
    %c0_i32_1 = arith.constant 0 : i32
    return %c0_i32, %c0_i32_0 : i32, i32
  }
  func.func @transform_6(%arg0: i32) -> (i32, i32) {
    %c0_i32 = arith.constant 0 : i32
    %c0_i32_0 = arith.constant 0 : i32
    %c0_i32_1 = arith.constant 0 : i32
    return %c0_i32, %c0_i32_0 : i32, i32
  }
  func.func @transform_7(%arg0: i32) -> (i32, i32) {
    %c0_i32 = arith.constant 0 : i32
    %c0_i32_0 = arith.constant 0 : i32
    %c0_i32_1 = arith.constant 0 : i32
    return %c0_i32, %c0_i32_0 : i32, i32
  }
  func.func @transform_8(%arg0: i32) -> (i32, i32) {
    %c0_i32 = arith.constant 0 : i32
    %c0_i32_0 = arith.constant 0 : i32
    %c0_i32_1 = arith.constant 0 : i32
    return %c0_i32, %c0_i32_0 : i32, i32
  }
  func.func @transform_9(%arg0: i32) -> (i32, i32) {
    %c0_i32 = arith.constant 0 : i32
    %c0_i32_0 = arith.constant 0 : i32
    %c0_i32_1 = arith.constant 0 : i32
    return %c0_i32, %c0_i32_0 : i32, i32
  }
  func.func @transform_10(%arg0: i32) -> (i32, i32) {
    %c0_i32 = arith.constant 0 : i32
    %c0_i32_0 = arith.constant 0 : i32
    %c0_i32_1 = arith.constant 0 : i32
    return %c0_i32, %c0_i32_0 : i32, i32
  }
  func.func @transform_11(%arg0: i32) -> (i32, i32) {
    %c0_i32 = arith.constant 0 : i32
    %c0_i32_0 = arith.constant 0 : i32
    %c0_i32_1 = arith.constant 0 : i32
    return %c0_i32, %c0_i32_0 : i32, i32
  }
  func.func @transform_12(%arg0: i32) -> (i32, i32) {
    %c0_i32 = arith.constant 0 : i32
    %c0_i32_0 = arith.constant 0 : i32
    %c0_i32_1 = arith.constant 0 : i32
    return %c0_i32, %c0_i32_0 : i32, i32
  }
  func.func @transform_13(%arg0: i32) -> (i32, i32) {
    %c0_i32 = arith.constant 0 : i32
    %c0_i32_0 = arith.constant 0 : i32
    %c0_i32_1 = arith.constant 0 : i32
    return %c0_i32, %c0_i32_0 : i32, i32
  }
  func.func @transform_14(%arg0: i32) -> (i32, i32) {
    %c0_i32 = arith.constant 0 : i32
    %c0_i32_0 = arith.constant 0 : i32
    %c0_i32_1 = arith.constant 0 : i32
    return %c0_i32, %c0_i32_0 : i32, i32
  }
  func.func @transform_15(%arg0: i32) -> (i32, i32) {
    %c0_i32 = arith.constant 0 : i32
    %c0_i32_0 = arith.constant 0 : i32
    %c0_i32_1 = arith.constant 0 : i32
    return %c0_i32, %c0_i32_0 : i32, i32
  }
  func.func @transform_16(%arg0: i32) -> (i32, i32) {
    %c0_i32 = arith.constant 0 : i32
    %c0_i32_0 = arith.constant 0 : i32
    %c0_i32_1 = arith.constant 0 : i32
    return %c0_i32, %c0_i32_0 : i32, i32
  }
  func.func @transform_17(%arg0: i32) -> (i32, i32) {
    %c0_i32 = arith.constant 0 : i32
    %c0_i32_0 = arith.constant 0 : i32
    return %arg0, %c0_i32 : i32, i32
  }
}

</mosaic_0001>

<bundles_post_ra>
// kernel: tpu_custom_call.1
= control target key start
LH: loop header
LB: loop body
LE: loop exit
PB: predicated region body
PF: predicated region fallthrough
CT: control target
= control target key end

     0   :  { %s1746_s0 = inlined_call_operand.hbm [shape: bf16[8,32], index: 0, kind: input, shape index: {}]   ;;  %s1747_s1 = inlined_call_operand.hbm [shape: bf16[32,128], index: 1, kind: input, shape index: {}]   ;;  %s1748_s2 = inlined_call_operand.vmem [shape: f32[1,128], index: 2, kind: input, shape index: {}]   ;;  %s1749_s3 = inlined_call_operand.hbm [shape: bf16[128,128], index: 3, kind: input, shape index: {}]   ;;  %s1750_s4 = inlined_call_operand.vmem [shape: f32[1,128], index: 4, kind: input, shape index: {}]   ;;  %s1751_s5 = inlined_call_operand.hbm [shape: bf16[128,128], index: 5, kind: input, shape index: {}]   ;;  %s1752_s6 = inlined_call_operand.vmem [shape: f32[1,128], index: 6, kind: input, shape index: {}]   ;;  %s1753_s7 = inlined_call_operand.hbm [shape: bf16[128,128], index: 7, kind: input, shape index: {}]   ;;  %s1754_s8 = inlined_call_operand.vmem [shape: f32[1,128], index: 8, kind: input, shape index: {}]   ;;  %s1755_s9 = inlined_call_operand.hbm [shape: bf16[128,128], index: 9, kind: input, shape index: {}]   ;;  %s1756_s10 = inlined_call_operand.vmem [shape: f32[1,128], index: 10, kind: input, shape index: {}]   ;;  %s1757_s11 = inlined_call_operand.hbm [shape: bf16[128,128], index: 11, kind: input, shape index: {}]   ;;  %s1758_s12 = inlined_call_operand.vmem [shape: f32[1,128], index: 12, kind: input, shape index: {}]   ;;  %s1759_s13 = inlined_call_operand.hbm [shape: bf16[128,128], index: 13, kind: input, shape index: {}]   ;;  %s1760_s14 = inlined_call_operand.vmem [shape: f32[1,128], index: 14, kind: input, shape index: {}]   ;;  %s1761_s15 = inlined_call_operand.hbm [shape: bf16[128,128], index: 15, kind: input, shape index: {}]   ;;  %s1762_s16 = inlined_call_operand.vmem [shape: f32[1,128], index: 16, kind: input, shape index: {}]   ;;  %s1763_s17 = inlined_call_operand.hbm [shape: f32[8,128], index: 17, kind: output, shape index: {}]  }
   0x1   :  { %1764 = sst [smem:[#allocation24_spill]] %s1746_s0 }
   0x2   :  { %1765 = sst [smem:[#allocation25_spill]] %s1747_s1 }
   0x3   :  { %22 = vsyncpa [#allocation3], 0 }
   0x4   :  { %23 = vsyncpa [#allocation6], 0 }
   0x5   :  { %24 = vsyncpa [#allocation9], 0 }
   0x6   :  { %25 = vsyncpa [#allocation12], 0 }
   0x7   :  { %26 = vsyncpa [#allocation15], 0  ;;  %s1766_s26 = sld [smem:[#allocation25_spill]] }
   0xd   :  { %s43_s27 = sshll.u32 %s1766_s26, 4  ;;  %s44_s27 = int_to_ptr.hbm [resolvable:$true] %s43_s27 }
   0xe   :  { %27 = vsyncpa [#allocation4], 0  ;;  %s1544_s28 = smov [#allocation5]   ;;  %s73_s18 = sshll.u32 %s1751_s5, 4  ;;  %s74_s18 = int_to_ptr.hbm [resolvable:$true] %s73_s18 }
   0xf   :  { %s45_s29 = sshll.u32 %s1544_s28, 4  ;;  %s1545_s19 = smov 64   ;;  %s46_s29 = int_to_ptr.vmem [resolvable:$true] %s45_s29 }
  0x10   :  { %s1546_s1 = smov 4   ;;  %s1547_s20 = smov [#allocation8]  }
  0x11   :  { %51 = dma.hbm_to_vmem [thread:$0]  %s44_s27, 256, %s46_s29, [#allocation6], %s1545_s19, %s1545_s19, %s1546_s1  }
  0x12   :  { %s75_s21 = sshll.u32 %s1547_s20, 4  ;;  %s103_s24 = sshll.u32 %s1755_s9, 4  ;;  %s76_s21 = int_to_ptr.vmem [resolvable:$true] %s75_s21  ;;  %s104_s24 = int_to_ptr.hbm [resolvable:$true] %s103_s24 }
  0x13   :  { %81 = dma.hbm_to_vmem [thread:$0]  %s74_s18, 1024, %s76_s21, [#allocation9], %s1545_s19, %s1545_s19, %s1546_s1  }
  0x14   :  { %s133_s26 = sshll.u32 %s1759_s13, 4  ;;  %s1548_s28 = smov [#allocation11]   ;;  %s134_s26 = int_to_ptr.hbm [resolvable:$true] %s133_s26 }
  0x15   :  { %s105_s0 = sshll.u32 %s1548_s28, 4  ;;  %s1549_s27 = smov [#allocation14]   ;;  %s106_s0 = int_to_ptr.vmem [resolvable:$true] %s105_s0 }
  0x16   :  { %111 = dma.hbm_to_vmem [thread:$0]  %s104_s24, 1024, %s106_s0, [#allocation12], %s1545_s19, %s1545_s19, %s1546_s1  }
  0x17   :  { %s135_s9 = sshll.u32 %s1549_s27, 4  ;;  %s1767_s20 = sld [smem:[#allocation24_spill]]  ;;  %s136_s9 = int_to_ptr.vmem [resolvable:$true] %s135_s9 }
  0x18   :  { %141 = dma.hbm_to_vmem [thread:$0]  %s134_s26, 1024, %s136_s9, [#allocation15], %s1545_s19, %s1545_s19, %s1546_s1  }
  0x19   :  { %s58_s21 = sshll.u32 %s1749_s3, 4  ;;  %s1550_s23 = smov [#allocation2]   ;;  %s59_s21 = int_to_ptr.hbm [resolvable:$true] %s58_s21 }
  0x1a   :  { %s35_s5 = sshll.u32 %s1550_s23, 4  ;;  %s1551_s24 = smov [#allocation7]   ;;  %s36_s5 = int_to_ptr.vmem [resolvable:$true] %s35_s5 }
  0x1b   :  { %s60_s25 = sshll.u32 %s1551_s24, 4  ;;  %s88_s27 = sshll.u32 %s1753_s7, 4  ;;  %s61_s25 = int_to_ptr.vmem [resolvable:$true] %s60_s25  ;;  %s89_s27 = int_to_ptr.hbm [resolvable:$true] %s88_s27 }
  0x1c   :  { %66 = dma.hbm_to_vmem [thread:$0]  %s59_s21, 1024, %s61_s25, [#allocation6], %s1545_s19, %s1545_s19, %s1546_s1  }
  0x1d   :  { %s33_s22 = sshll.u32 %s1767_s20, 4  ;;  %s118_s3 = sshll.u32 %s1757_s11, 4  ;;  %s34_s22 = int_to_ptr.hbm [resolvable:$true] %s33_s22  ;;  %s119_s3 = int_to_ptr.hbm [resolvable:$true] %s118_s3 }
  0x1e   :  { %38 = dma.hbm_to_vmem [thread:$0]  %s34_s22, 64, %s36_s5, [#allocation3]  }
  0x1f   :  { %s1552_s29 = smov [#allocation10]   ;;  %s1553_s20 = smov [#allocation13]  }
  0x20   :  { %s90_s30 = sshll.u32 %s1552_s29, 4  ;;  %s120_s7 = sshll.u32 %s1553_s20, 4  ;;  %s91_s30 = int_to_ptr.vmem [resolvable:$true] %s90_s30  ;;  %s121_s7 = int_to_ptr.vmem [resolvable:$true] %s120_s7 }
  0x21   :  { %96 = dma.hbm_to_vmem [thread:$0]  %s89_s27, 1024, %s91_s30, [#allocation9], %s1545_s19, %s1545_s19, %s1546_s1  }
  0x22   :  { %s148_s18 = sshll.u32 %s1761_s15, 4  ;;  %s1554_s11 = smov [#allocation16]   ;;  %s149_s18 = int_to_ptr.hbm [resolvable:$true] %s148_s18 }
  0x23   :  { %126 = dma.hbm_to_vmem [thread:$0]  %s119_s3, 1024, %s121_s7, [#allocation12], %s1545_s19, %s1545_s19, %s1546_s1  }
  0x24   :  { %s150_s21 = sshll.u32 %s1554_s11, 4  ;;  %s151_s21 = int_to_ptr.vmem [resolvable:$true] %s150_s21 }
  0x25   :  { %156 = dma.hbm_to_vmem [thread:$0]  %s149_s18, 1024, %s151_s21, [#allocation15], %s1545_s19, %s1545_s19, %s1546_s1  }
  0x26   :  { %1532 = dma.done.wait [#allocation3], 64  }
  0x27   :  { %1533 = vsyncadd [#allocation3], 4294967232 }
  0x28   :  { %1534 = dma.done.wait [#allocation6], 1280  }
  0x29   :  { %1535 = vsyncadd [#allocation6], 4294966016 }
  0x2a   :  { %1536 = dma.done.wait [#allocation9], 2048  }
  0x2b   :  { %1537 = vsyncadd [#allocation9], 4294965248 }
  0x2c   :  { %1538 = dma.done.wait [#allocation12], 2048  }
  0x2d   :  { %1539 = vsyncadd [#allocation12], 4294965248 }
  0x2e   :  { %1540 = dma.done.wait [#allocation15], 2048  }
  0x2f   :  { %1541 = vsyncadd [#allocation15], 4294965248  ;;  %v1202_v0 = vld [vmem:[#allocation5 + $0x8] sm:$0xff]  ;;  %v1201_v2 = vld [vmem:[#allocation5] sm:$0xff]  ;;  %vm217_vm0 = vcmask 261120   ;;  %s953_s3 = sshll.u32 %s1763_s17, 4  ;;  %s954_s3 = int_to_ptr.hbm [resolvable:$true] %s953_s3 }
  0x30   :  { %v1210_v1 = vld [vmem:[#allocation7 + $0x38] sm:$0xff]  ;;  %227 = vmatpush.bf16.msra.mxu0 %v1202_v0  ;;  %v1209_v3 = vld [vmem:[#allocation7 + $0x30] sm:$0xff]  ;;  %v196_v4 = vld [vmem:[#allocation2] sm:$0xf] }
  0x31   :  { %320 = vmatpush.bf16.msra.mxu1 %v1210_v1  ;;  %v1208_v5 = vld [vmem:[#allocation7 + $0x28] sm:$0xff]  ;;  %v1207_v6 = vld [vmem:[#allocation7 + $0x20] sm:$0xff]  ;;  %v1206_v7 = vld [vmem:[#allocation7 + $0x18] sm:$0xff] }
  0x32   :  { %v1205_v8 = vld [vmem:[#allocation7 + $0x10] sm:$0xff]  ;;  %v1204_v9 = vld [vmem:[#allocation7 + $0x8] sm:$0xff]  ;;  %v1203_v10 = vld [vmem:[#allocation7] sm:$0xff] }
  0x33   :  { %v1218_v11 = vld [vmem:[#allocation8 + $0x38] sm:$0xff]  ;;  %v1217_v12 = vld [vmem:[#allocation8 + $0x30] sm:$0xff]  ;;  %v1216_v13 = vld [vmem:[#allocation8 + $0x28] sm:$0xff] }
  0x34   :  { %228 = vmatpush.bf16.msra.mxu0 %v1201_v2  ;;  %386 = vmatpush.bf16.msra.mxu2 %v1218_v11  ;;  %v1215_v14 = vld [vmem:[#allocation8 + $0x20] sm:$0xff]  ;;  %v1214_v15 = vld [vmem:[#allocation8 + $0x18] sm:$0xff]  ;;  %v1213_v16 = vld [vmem:[#allocation8 + $0x10] sm:$0xff] }
  0x35   :  { %321 = vmatpush.bf16.msra.mxu1 %v1209_v3  ;;  %v1272_v17 = vld [vmem:[%s1748_s2] ss:$0 sm:$0xff]  ;;  %v1211_v23 = vld [vmem:[#allocation8] sm:$0xff]  ;;  %v1226_v37 = vld [vmem:[#allocation10 + $0x38] sm:$0xff]  ;;  %v401_v3 = vlaneseq }
  0x36   :  { %v1212_v22 = vld [vmem:[#allocation8 + $0x8] sm:$0xff]  ;;  %533 = vmatpush.bf16.msra.mxu3 %v1226_v37  ;;  %v1225_v39 = vld [vmem:[#allocation10 + $0x30] sm:$0xff]  ;;  %v1223_v42 = vld [vmem:[#allocation10 + $0x20] sm:$0xff] }
  0x37   :  { %975 = vmatmul.msk.bf16.vlgmr.msra.gmra.mxu0 %vm217_vm0, %v196_v4  ;;  %v1273_v24 = vld [vmem:[%s1750_s4] ss:$0 sm:$0xff]  ;;  %v1222_v46 = vld [vmem:[#allocation10 + $0x18] sm:$0xff]  ;;  %v1221_v49 = vld [vmem:[#allocation10 + $0x10] sm:$0xff] }
  0x38   :  { %387 = vmatpush.bf16.msra.mxu2 %v1217_v12  ;;  %v1274_v30 = vld [vmem:[%s1752_s6] ss:$0 sm:$0xff]  ;;  %v1219_v53 = vld [vmem:[#allocation10] sm:$0xff]  ;;  %v1234_v57 = vld [vmem:[#allocation11 + $0x38] sm:$0xff] }
  0x39   :  { %322 = vmatpush.bf16.msra.mxu1 %v1208_v5  ;;  %v1224_v40 = vld [vmem:[#allocation10 + $0x28] sm:$0xff]  ;;  %599 = vmatpush.bf16.msrb.mxu0 %v1234_v57  ;;  %v1233_v59 = vld [vmem:[#allocation11 + $0x30] sm:$0xff]  ;;  %v1231_v2 = vld [vmem:[#allocation11 + $0x20] sm:$0xff] }
  0x3a   :  { %534 = vmatpush.bf16.msra.mxu3 %v1225_v39  ;;  %v1220_v50 = vld [vmem:[#allocation10 + $0x8] sm:$0xff]  ;;  %v1230_v4 = vld [vmem:[#allocation11 + $0x18] sm:$0xff] }
  0x3b   :  { %v1232_v0 = vld [vmem:[#allocation11 + $0x28] sm:$0xff] }
  0x3c   :  { %388 = vmatpush.bf16.msra.mxu2 %v1216_v13 }
  0x3d   :  { %323 = vmatpush.bf16.msra.mxu1 %v1207_v6  ;;  %600 = vmatpush.bf16.msrb.mxu0 %v1233_v59 }
  0x3e   :  { %535 = vmatpush.bf16.msra.mxu3 %v1224_v40  ;;  %v1241_v40 = vld [vmem:[#allocation13 + $0x30] sm:$0xff] }
  0x40   :  { %389 = vmatpush.bf16.msra.mxu2 %v1215_v14 }
  0x41   :  { %324 = vmatpush.bf16.msra.mxu1 %v1206_v7  ;;  %601 = vmatpush.bf16.msrb.mxu0 %v1232_v0  ;;  %v402_v7 = vand.u32 127, %v401_v3  ;;  %v1247_v3 = vld [vmem:[#allocation14 + $0x20] sm:$0xff] }
  0x42   :  { %536 = vmatpush.bf16.msra.mxu3 %v1223_v42 }
  0x43   :  { %vm403_vm4 = vcmp.lt.s32.totalorder %v402_v7, 64 }
  0x44   :  { %390 = vmatpush.bf16.msra.mxu2 %v1214_v15 }
  0x45   :  { %325 = vmatpush.bf16.msra.mxu1 %v1205_v8  ;;  %602 = vmatpush.bf16.msrb.mxu0 %v1231_v2 }
  0x46   :  { %537 = vmatpush.bf16.msra.mxu3 %v1222_v46 }
  0x48   :  { %391 = vmatpush.bf16.msra.mxu2 %v1213_v16 }
  0x49   :  { %326 = vmatpush.bf16.msra.mxu1 %v1204_v9  ;;  %603 = vmatpush.bf16.msrb.mxu0 %v1230_v4  ;;  %v1229_v9 = vld [vmem:[#allocation11 + $0x10] sm:$0xff]  ;;  %v1246_v4 = vld [vmem:[#allocation14 + $0x18] sm:$0xff] }
  0x4a   :  { %538 = vmatpush.bf16.msra.mxu3 %v1221_v49 }
  0x4c   :  { %392 = vmatpush.bf16.msra.mxu2 %v1212_v22 }
  0x4d   :  { %327 = vmatpush.bf16.msra.mxu1 %v1203_v10  ;;  %604 = vmatpush.bf16.msrb.mxu0 %v1229_v9 }
  0x4e   :  { %539 = vmatpush.bf16.msra.mxu3 %v1220_v50  ;;  %v1237_v50 = vld [vmem:[#allocation13 + $0x10] sm:$0xff] }
  0x50   :  { %393 = vmatpush.bf16.msra.mxu2 %v1211_v23  ;;  %v1228_v23 = vld [vmem:[#allocation11 + $0x8] sm:$0xff] }
  0x51   :  { %605 = vmatpush.bf16.msrb.mxu0 %v1228_v23  ;;  %v1258_v23 = vld [vmem:[#allocation16 + $0x38] sm:$0xff] }
  0x52   :  { %540 = vmatpush.bf16.msra.mxu3 %v1219_v53 }
  0x56   :  { %889 = vmatpush.bf16.msrb.mxu3 %v1258_v23 }
  0xb4   :  { %v230_v18 = vpop.f32.mrf.mxu0 }
  0xb5   :  { %v231_v19 = vadd.f32 %v1272_v17, %v230_v18  ;;  %v1555_v17 = vmov 0.0  }
  0xb6   :  { %v1717_v18 = vsel %vm403_vm4, 1.0, %v1555_v17 }
  0xb7   :  { %v268_v20 = vpack.c.bf16 %v231_v19, %v231_v19 }
  0xb9   :  { %328 = vmatmul.bf16.vlgmr.msra.gmra.mxu1 %v268_v20 }
  0xbc   :  { %v232_v21 = vpop.f32.mrf.mxu0 }
 0x136   :  { %v329_v25 = vpop.f32.mrf.mxu1 }
 0x137   :  { %v330_v26 = vadd.f32 %v1273_v24, %v329_v25  ;;  %v1227_v24 = vld [vmem:[#allocation11] sm:$0xff]  ;;  %v1275_v25 = vld [vmem:[%s1754_s8] ss:$0 sm:$0xff] }
 0x138   :  { %606 = vmatpush.bf16.msrb.mxu0 %v1227_v24  ;;  %v1257_v24 = vld [vmem:[#allocation16 + $0x30] sm:$0xff] }
 0x139   :  { %v333_v27 = vmax.f32 %v330_v26, 0.0  ;;  %890 = vmatpush.bf16.msrb.mxu3 %v1257_v24 }
 0x13b   :  { %v334_v28 = vpack.c.bf16 %v333_v27, %v333_v27 }
 0x13d   :  { %394 = vmatmul.bf16.vlgmr.msra.gmra.mxu2 %v334_v28 }
 0x13e   :  { %v331_v29 = vpop.f32.mrf.mxu1 }
 0x1c0   :  { %v395_v31 = vpop.f32.mrf.mxu2 }
 0x1c1   :  { %v396_v32 = vadd.f32 %v1274_v30, %v395_v31  ;;  %v1276_v31 = vld [vmem:[%s1756_s10] ss:$0 sm:$0xff] }
 0x1c3   :  { %v399_v33 = vmax.f32 %v396_v32, 0.0 }
 0x1c5   :  { %v1707_v34 = vadd.f32 %v399_v33, %v231_v19 }
 0x1c7   :  { %406 = vadd.xlane.f32.xlu0 %v1707_v34  ;;  %v408_v36 = vmul.f32 %v1707_v34, %v1707_v34 }
 0x1c8   :  { %v397_v35 = vpop.f32.mrf.mxu2 }
 0x1cf   :  { %409 = vadd.xlane.f32.xlu0 %v408_v36 }
 0x23a   :  { %v407_v38 = vpop.xlane.xlu0 %406 }
 0x23b   :  { %v1712_v41 = vmul.f32 0.015625, %v407_v38 }
 0x23d   :  { %v412_v43 = vmul.f32 %v1712_v41, %v407_v38  ;;  %v444_v15 = vsub.f32 %v1707_v34, %v1712_v41  ;;  %v1242_v38 = vld [vmem:[#allocation13 + $0x38] sm:$0xff]  ;;  %v1240_v41 = vld [vmem:[#allocation13 + $0x28] sm:$0xff] }
 0x23e   :  { %724 = vmatpush.bf16.msrb.mxu1 %v1242_v38 }
 0x242   :  { %v410_v44 = vpop.xlane.xlu0 %409  ;;  %725 = vmatpush.bf16.msrb.mxu1 %v1241_v40 }
 0x243   :  { %v413_v45 = vsub.f32 %v410_v44, %v412_v43  ;;  %v1239_v43 = vld [vmem:[#allocation13 + $0x20] sm:$0xff] }
 0x245   :  { %v414_v47 = vmax.f32 %v413_v45, 0.0 }
 0x246   :  { %726 = vmatpush.bf16.msrb.mxu1 %v1240_v41 }
 0x247   :  { %v415_v48 = vmul.f32 0.015873017, %v414_v47  ;;  %v1238_v47 = vld [vmem:[#allocation13 + $0x18] sm:$0xff] }
 0x249   :  { %1280 = vrsqrt.f32 %v415_v48  ;;  %vm423_vm1 = vcmp.eq.f32.partialorder %v415_v48, inf  ;;  %v426_v61 = vand.u32 2147483648, %v415_v48  ;;  %vm425_vm2 = vcmp.eq.f32.partialorder %v415_v48, 0.0 }
 0x24a   :  { %727 = vmatpush.bf16.msrb.mxu1 %v1239_v43 }
 0x24e   :  { %728 = vmatpush.bf16.msrb.mxu1 %v1238_v47 }
 0x24f   :  { %v1281_v51 = vpop.eup %1280 }
 0x250   :  { %v417_v52 = vmul.f32 %v1281_v51, %v415_v48 }
 0x252   :  { %v418_v54 = vmul.f32 %v1281_v51, %v417_v52  ;;  %729 = vmatpush.bf16.msrb.mxu1 %v1237_v50 }
 0x254   :  { %v419_v55 = vmul.f32 0.5, %v418_v54  ;;  %v1235_v54 = vld [vmem:[#allocation13] sm:$0xff] }
 0x256   :  { %v420_v56 = vsub.f32 1.5, %v419_v55 }
 0x258   :  { %v421_v58 = vmul.f32 %v1281_v51, %v420_v56  ;;  %v1236_v51 = vld [vmem:[#allocation13 + $0x8] sm:$0xff] }
 0x259   :  { %730 = vmatpush.bf16.msrb.mxu1 %v1236_v51 }
 0x25a   :  { %v422_v60 = vmul.f32 %v421_v58, %v415_v48  ;;  %v1250_v58 = vld [vmem:[#allocation14 + $0x38] sm:$0xff] }
 0x25b   :  { %823 = vmatpush.bf16.msrb.mxu2 %v1250_v58 }
 0x25c   :  { %v424_v62 = vsel %vm423_vm1, %v415_v48, %v422_v60  ;;  %v1249_v60 = vld [vmem:[#allocation14 + $0x30] sm:$0xff] }
 0x25d   :  { %v427_v63 = vsel %vm425_vm2, %v426_v61, %v424_v62  ;;  %731 = vmatpush.bf16.msrb.mxu1 %v1235_v54 }
 0x25e   :  { %v428_v1 = vadd.f32 1e-06, %v427_v63 }
 0x25f   :  { %824 = vmatpush.bf16.msrb.mxu2 %v1249_v60 }
 0x260   :  { %1282 = vrcp.f32 %v428_v1  ;;  %v440_v10 = vand.u32 2147483648, %v428_v1  ;;  %v438_v12 = vand.u32 2147483647, %v428_v1  ;;  %vm434_vm5 = vweird.f32 %v428_v1 }
 0x262   :  { %v441_v14 = vor.u32 1.1754944e-38, %v440_v10  ;;  %vm439_vm7 = vcmp.eq.f32.partialorder %v438_v12, 8.507059e+37 }
 0x266   :  { %v1283_v5 = vpop.eup %1282 }
 0x267   :  { %v430_v6 = vmul.f32 %v1283_v5, %v428_v1  ;;  %vm435_vm3 = vweird.f32 %v1283_v5  ;;  %v1248_v1 = vld [vmem:[#allocation14 + $0x28] sm:$0xff] }
 0x268   :  { %vm436_vm6 = vmor %vm434_vm5, %vm435_vm3  ;;  %825 = vmatpush.bf16.msrb.mxu2 %v1248_v1 }
 0x269   :  { %v431_v8 = vsub.f32 1.0, %v430_v6 }
 0x26b   :  { %v432_v11 = vmul.f32 %v1283_v5, %v431_v8  ;;  %v1245_v8 = vld [vmem:[#allocation14 + $0x10] sm:$0xff] }
 0x26c   :  { %826 = vmatpush.bf16.msrb.mxu2 %v1247_v3 }
 0x26d   :  { %v433_v13 = vadd.f32 %v1283_v5, %v432_v11 }
 0x26f   :  { %v437_v16 = vsel %vm436_vm6, %v1283_v5, %v433_v13  ;;  %v1244_v13 = vld [vmem:[#allocation14 + $0x8] sm:$0xff] }
 0x270   :  { %v442_v19 = vsel %vm439_vm7, %v441_v14, %v437_v16  ;;  %827 = vmatpush.bf16.msrb.mxu2 %v1246_v4 }
 0x271   :  { %v445_v20 = vmul.f32 %v444_v15, %v442_v19 }
 0x273   :  { %v446_v21 = vmul.f32 %v1717_v18, %v445_v20 }
 0x274   :  { %828 = vmatpush.bf16.msrb.mxu2 %v1245_v8 }
 0x275   :  { %v481_v22 = vpack.c.bf16 %v446_v21, %v446_v21 }
 0x277   :  { %541 = vmatmul.bf16.vlgmr.msra.gmra.mxu3 %v481_v22  ;;  %v1243_v22 = vld [vmem:[#allocation14] sm:$0xff] }
 0x278   :  { %829 = vmatpush.bf16.msrb.mxu2 %v1244_v13 }
 0x27c   :  { %830 = vmatpush.bf16.msrb.mxu2 %v1243_v22 }
 0x2fa   :  { %v542_v26 = vpop.f32.mrf.mxu3 }
 0x2fb   :  { %v543_v27 = vadd.f32 %v1275_v25, %v542_v26  ;;  %v1256_v25 = vld [vmem:[#allocation16 + $0x28] sm:$0xff]  ;;  %v1255_v26 = vld [vmem:[#allocation16 + $0x20] sm:$0xff] }
 0x2fc   :  { %891 = vmatpush.bf16.msrb.mxu3 %v1256_v25 }
 0x2fd   :  { %v546_v28 = vmax.f32 %v543_v27, 0.0  ;;  %v1254_v27 = vld [vmem:[#allocation16 + $0x18] sm:$0xff] }
 0x2ff   :  { %v547_v29 = vpack.c.bf16 %v546_v28, %v546_v28  ;;  %v1253_v28 = vld [vmem:[#allocation16 + $0x10] sm:$0xff] }
 0x300   :  { %892 = vmatpush.bf16.msrb.mxu3 %v1255_v26 }
 0x301   :  { %607 = vmatmul.bf16.vlgmr.msrb.gmra.mxu0 %v547_v29  ;;  %v1277_v29 = vld [vmem:[%s1758_s12] ss:$0 sm:$0xff] }
 0x302   :  { %v544_v30 = vpop.f32.mrf.mxu3 }
 0x304   :  { %893 = vmatpush.bf16.msrb.mxu3 %v1254_v27 }
 0x308   :  { %894 = vmatpush.bf16.msrb.mxu3 %v1253_v28 }
 0x37e   :  { %v608_v32 = vpop.f32.mrf.mxu0 }
 0x37f   :  { %v609_v33 = vadd.f32 %v1276_v31, %v608_v32 }
 0x381   :  { %v612_v34 = vmax.f32 %v609_v33, 0.0 }
 0x383   :  { %v1726_v35 = vadd.f32 %v612_v34, %v446_v21  ;;  %v1252_v34 = vld [vmem:[#allocation16 + $0x8] sm:$0xff] }
 0x384   :  { %895 = vmatpush.bf16.msrb.mxu3 %v1252_v34 }
 0x385   :  { %614 = vadd.xlane.f32.xlu1 %v1726_v35  ;;  %v616_v37 = vmul.f32 %v1726_v35, %v1726_v35 }
 0x386   :  { %v610_v36 = vpop.f32.mrf.mxu0 }
 0x387   :  { %v1278_v36 = vld [vmem:[%s1760_s14] ss:$0 sm:$0xff]  ;;  %s1556_s14 = smov [#allocation17]  }
 0x38d   :  { %617 = vadd.xlane.f32.xlu1 %v616_v37 }
 0x3f8   :  { %v615_v39 = vpop.xlane.xlu1 %614 }
 0x3f9   :  { %v619_v42 = vmul.f32 0.015625, %v615_v39 }
 0x3fb   :  { %v620_v44 = vmul.f32 %v619_v42, %v615_v39  ;;  %v652_v15 = vsub.f32 %v1726_v35, %v619_v42  ;;  %v1251_v35 = vld [vmem:[#allocation16] sm:$0xff]  ;;  %v1279_v42 = vld [vmem:[%s1762_s16] ss:$0 sm:$0xff]  ;;  %s951_s16 = sshll.u32 %s1556_s14, 4  ;;  %s952_s16 = int_to_ptr.vmem [resolvable:$true] %s951_s16 }
 0x3fc   :  { %896 = vmatpush.bf16.msrb.mxu3 %v1251_v35 }
 0x400   :  { %v618_v45 = vpop.xlane.xlu1 %617 }
 0x401   :  { %v621_v46 = vsub.f32 %v618_v45, %v620_v44 }
 0x403   :  { %v622_v48 = vmax.f32 %v621_v46, 0.0 }
 0x405   :  { %v623_v49 = vmul.f32 0.015873017, %v622_v48 }
 0x407   :  { %1284 = vrsqrt.f32 %v623_v49  ;;  %vm631_vm8 = vcmp.eq.f32.partialorder %v623_v49, inf  ;;  %v634_v62 = vand.u32 2147483648, %v623_v49  ;;  %vm633_vm9 = vcmp.eq.f32.partialorder %v623_v49, 0.0 }
 0x40d   :  { %v1285_v52 = vpop.eup %1284 }
 0x40e   :  { %v625_v53 = vmul.f32 %v1285_v52, %v623_v49 }
 0x410   :  { %v626_v55 = vmul.f32 %v1285_v52, %v625_v53 }
 0x412   :  { %v627_v56 = vmul.f32 0.5, %v626_v55 }
 0x414   :  { %v628_v57 = vsub.f32 1.5, %v627_v56 }
 0x416   :  { %v629_v59 = vmul.f32 %v1285_v52, %v628_v57 }
 0x418   :  { %v630_v61 = vmul.f32 %v629_v59, %v623_v49 }
 0x41a   :  { %v632_v63 = vsel %vm631_vm8, %v623_v49, %v630_v61 }
 0x41b   :  { %v635_v0 = vsel %vm633_vm9, %v634_v62, %v632_v63 }
 0x41c   :  { %v636_v2 = vadd.f32 1e-06, %v635_v0 }
 0x41e   :  { %1286 = vrcp.f32 %v636_v2  ;;  %v648_v9 = vand.u32 2147483648, %v636_v2  ;;  %v646_v11 = vand.u32 2147483647, %v636_v2  ;;  %vm642_vm11 = vweird.f32 %v636_v2 }
 0x420   :  { %v649_v14 = vor.u32 1.1754944e-38, %v648_v9  ;;  %vm647_vm13 = vcmp.eq.f32.partialorder %v646_v11, 8.507059e+37 }
 0x424   :  { %v1287_v5 = vpop.eup %1286 }
 0x425   :  { %v638_v6 = vmul.f32 %v1287_v5, %v636_v2  ;;  %vm643_vm10 = vweird.f32 %v1287_v5 }
 0x426   :  { %vm644_vm12 = vmor %vm642_vm11, %vm643_vm10 }
 0x427   :  { %v639_v7 = vsub.f32 1.0, %v638_v6 }
 0x429   :  { %v640_v10 = vmul.f32 %v1287_v5, %v639_v7 }
 0x42b   :  { %v641_v12 = vadd.f32 %v1287_v5, %v640_v10 }
 0x42d   :  { %v645_v16 = vsel %vm644_vm12, %v1287_v5, %v641_v12 }
 0x42e   :  { %v650_v17 = vsel %vm647_vm13, %v649_v14, %v645_v16 }
 0x42f   :  { %v653_v19 = vmul.f32 %v652_v15, %v650_v17 }
 0x431   :  { %v654_v20 = vmul.f32 %v1717_v18, %v653_v19 }
 0x433   :  { %v672_v21 = vpack.c.bf16 %v654_v20, %v654_v20 }
 0x435   :  { %732 = vmatmul.bf16.vlgmr.msrb.gmra.mxu1 %v672_v21 }
 0x4b2   :  { %v733_v30 = vpop.f32.mrf.mxu1 }
 0x4b3   :  { %v734_v31 = vadd.f32 %v1277_v29, %v733_v30 }
 0x4b5   :  { %v771_v32 = vpack.c.bf16 %v734_v31, %v734_v31 }
 0x4b7   :  { %831 = vmatmul.bf16.vlgmr.msrb.gmra.mxu2 %v771_v32 }
 0x4ba   :  { %v735_v33 = vpop.f32.mrf.mxu1 }
 0x53a   :  { %v832_v37 = vpop.f32.mrf.mxu2 }
 0x53b   :  { %v833_v38 = vadd.f32 %v1278_v36, %v832_v37 }
 0x53d   :  { %v836_v39 = vmax.f32 %v833_v38, 0.0 }
 0x53f   :  { %v837_v40 = vpack.c.bf16 %v836_v39, %v836_v39 }
 0x541   :  { %897 = vmatmul.bf16.vlgmr.msrb.gmra.mxu3 %v837_v40 }
 0x542   :  { %v834_v41 = vpop.f32.mrf.mxu2 }
 0x5c4   :  { %v898_v43 = vpop.f32.mrf.mxu3 }
 0x5c5   :  { %v899_v44 = vadd.f32 %v1279_v42, %v898_v43 }
 0x5c7   :  { %v902_v45 = vmax.f32 %v899_v44, 0.0 }
 0x5c9   :  { %v903_v46 = vadd.f32 %v902_v45, %v734_v31 }
 0x5cb   :  { %904 = vadd.xlane.f32.xlu2 %v903_v46  ;;  %v906_v48 = vmul.f32 %v903_v46, %v903_v46 }
 0x5cc   :  { %v900_v47 = vpop.f32.mrf.mxu3 }
 0x5d3   :  { %907 = vadd.xlane.f32.xlu2 %v906_v48 }
 0x63e   :  { %v905_v49 = vpop.xlane.xlu2 %904 }
 0x63f   :  { %v909_v50 = vmul.f32 0.015625, %v905_v49 }
 0x641   :  { %v910_v51 = vmul.f32 %v909_v50, %v905_v49  ;;  %v942_v11 = vsub.f32 %v903_v46, %v909_v50 }
 0x646   :  { %v908_v52 = vpop.xlane.xlu2 %907 }
 0x647   :  { %v911_v53 = vsub.f32 %v908_v52, %v910_v51 }
 0x649   :  { %v912_v54 = vmax.f32 %v911_v53, 0.0 }
 0x64b   :  { %v913_v55 = vmul.f32 0.015873017, %v912_v54 }
 0x64d   :  { %1288 = vrsqrt.f32 %v913_v55  ;;  %vm921_vm14 = vcmp.eq.f32.partialorder %v913_v55, inf  ;;  %v924_v63 = vand.u32 2147483648, %v913_v55  ;;  %vm923_vm15 = vcmp.eq.f32.partialorder %v913_v55, 0.0 }
 0x653   :  { %v1289_v56 = vpop.eup %1288 }
 0x654   :  { %v915_v57 = vmul.f32 %v1289_v56, %v913_v55 }
 0x656   :  { %v916_v58 = vmul.f32 %v1289_v56, %v915_v57 }
 0x658   :  { %v917_v59 = vmul.f32 0.5, %v916_v58 }
 0x65a   :  { %v918_v60 = vsub.f32 1.5, %v917_v59 }
 0x65c   :  { %v919_v61 = vmul.f32 %v1289_v56, %v918_v60 }
 0x65e   :  { %v920_v62 = vmul.f32 %v919_v61, %v913_v55 }
 0x660   :  { %v922_v0 = vsel %vm921_vm14, %v913_v55, %v920_v62 }
 0x661   :  { %v925_v1 = vsel %vm923_vm15, %v924_v63, %v922_v0 }
 0x662   :  { %v926_v2 = vadd.f32 1e-06, %v925_v1 }
 0x664   :  { %1290 = vrcp.f32 %v926_v2  ;;  %v938_v6 = vand.u32 2147483648, %v926_v2  ;;  %v936_v8 = vand.u32 2147483647, %v926_v2  ;;  %vm932_vm1 = vweird.f32 %v926_v2 }
 0x666   :  { %v939_v10 = vor.u32 1.1754944e-38, %v938_v6  ;;  %vm937_vm3 = vcmp.eq.f32.partialorder %v936_v8, 8.507059e+37 }
 0x66a   :  { %v1291_v3 = vpop.eup %1290 }
 0x66b   :  { %v928_v4 = vmul.f32 %v1291_v3, %v926_v2  ;;  %vm933_vm0 = vweird.f32 %v1291_v3 }
 0x66c   :  { %vm934_vm2 = vmor %vm932_vm1, %vm933_vm0 }
 0x66d   :  { %v929_v5 = vsub.f32 1.0, %v928_v4 }
 0x66f   :  { %v930_v7 = vmul.f32 %v1291_v3, %v929_v5 }
 0x671   :  { %v931_v9 = vadd.f32 %v1291_v3, %v930_v7 }
 0x673   :  { %v935_v12 = vsel %vm934_vm2, %v1291_v3, %v931_v9 }
 0x674   :  { %v940_v13 = vsel %vm937_vm3, %v939_v10, %v935_v12 }
 0x675   :  { %v943_v14 = vmul.f32 %v942_v11, %v940_v13 }
 0x677   :  { %v944_v15 = vmul.f32 %v1717_v18, %v943_v14 }
 0x679   :  { %945 = vst [vmem:[#allocation17] sm:$0xff] %v944_v15 }
 0x67a   :  { %956 = dma.vmem_to_hbm [thread:$0]  %s952_s16, 128, %s954_s3, [#allocation4]  }
 0x67b   :  { %1542 = dma.done.wait [#allocation4], 128  }
 0x67c   :  { %1543 = vsyncadd [#allocation4], 4294967168 }
 0x67d   :  { %961 = vsyncpa [#allocation3], 1 }
 0x67e   :  { %962 = vsyncpa [#allocation6], 1 }
 0x67f   :  { %963 = vsyncpa [#allocation9], 1 }
 0x680   :  { %964 = vsyncpa [#allocation12], 1 }
 0x681   :  { %965 = vsyncpa [#allocation15], 1 }
 0x682   :  { %966 = vsyncpa [#allocation4], 1 }

</bundles_post_ra>
